<compile_context>
chip_gen: v5e
topology: v5e:2x2
jax: 0.10.0
libtpu: 0.0.40
codegen_flags: <defaults>
</compile_context>

<pallas_src>
import functools

import jax
import jax.numpy as jnp
from jax.experimental import pallas as pl
from jax.experimental.pallas import tpu as pltpu


def _round_up(n: int, m: int) -> int:
    return ((n + m - 1) // m) * m


@functools.lru_cache(maxsize=1)
def _vmem_capacity_bytes() -> int:
    """Per-core VMEM capacity; conservative 64 MiB fallback if the query fails."""
    try:
        return int(pltpu.get_tpu_info().vmem_capacity_bytes)
    except Exception:
        return 64 * 2**20


def _ae_kernel(x_ref, w1_ref, b1_ref, w2_ref, b2_ref, o_ref):
    """One batch tile of sigmoid(sigmoid(x @ W1 + b1) @ W2 + b2)."""
    # Cast activations to the weights' (bf16) dtype in-kernel: x travels
    # HBM -> VMEM exactly once, in its original dtype.
    x = x_ref[...].astype(w1_ref.dtype)                                # (bb, D)
    # Encoder: Linear(D -> H) + Sigmoid   (MXU matmul, f32 accumulation)
    h = jnp.dot(x, w1_ref[...], preferred_element_type=jnp.float32)    # (bb, Hp)
    h = jax.nn.sigmoid(h + b1_ref[...])                                # f32 VPU/EUP
    # Decoder: Linear(H -> D) + Sigmoid
    y = jnp.dot(h.astype(w2_ref.dtype), w2_ref[...],
                preferred_element_type=jnp.float32)                    # (bb, D)
    o_ref[...] = jax.nn.sigmoid(y + b2_ref[...]).astype(o_ref.dtype)


def prepare_params(w1, b1, w2, b2, *, compute_dtype=jnp.bfloat16):
    """Once-per-model weight prep (hoisted out of the per-call hot path).

    Pads the hidden dim to a multiple of 128 (lane-dense, full MXU contraction
    width) and casts weights to `compute_dtype`, biases to f32.
    Weights are laid out (in, out): w1 (D, H), w2 (H, D).
    """
    D, H = w1.shape
    Hp = _round_up(H, 128)
    w1p = jnp.pad(w1, ((0, 0), (0, Hp - H))).astype(compute_dtype)        # (D, Hp)
    b1p = jnp.pad(b1.reshape(1, -1), ((0, 0), (0, Hp - H))).astype(jnp.float32)
    # NOTE: padded rows of W2 MUST stay zero (see invariant at top of file).
    w2p = jnp.pad(w2, ((0, Hp - H), (0, 0))).astype(compute_dtype)        # (Hp, D)
    b2p = b2.reshape(1, -1).astype(jnp.float32)                           # (1, D)
    return w1p, b1p, w2p, b2p


@functools.partial(jax.jit, static_argnames=("block_b",))
def autoencoder_forward(x, w1, b1, w2, b2, *, block_b=512):
    """Forward pass: x (B, D) -> (B, D).

    Expects weights as produced by `prepare_params`: w1 (D, Hp), b1 (1|_, Hp),
    w2 (Hp, D), b2 (1|_, D). Equivalent to PyTorch's
    sigmoid(sigmoid(x @ W1.T + b1) @ W2.T + b2).
    """
    B, D = x.shape
    Hp = w1.shape[1]
    out_dtype = x.dtype
    b1 = b1.reshape(1, -1)
    b2 = b2.reshape(1, -1)

    x_itm = jnp.dtype(x.dtype).itemsize
    w_itm = jnp.dtype(w1.dtype).itemsize
    o_itm = jnp.dtype(out_dtype).itemsize

    # ----- batch tile selection -----------------------------------------------
    bb = _round_up(min(block_b, _round_up(B, 8)), 8)
    n_prog = pl.cdiv(B, bb)
    if n_prog < 2 and B > 256:          # keep both v7x TensorCores busy
        n_prog = 2
    bb = _round_up(pl.cdiv(B, n_prog), 8)   # rebalance -> minimal edge waste

    # ----- generation-aware VMEM budget (per TensorCore) ------------------------
    vmem_cap = _vmem_capacity_bytes()
    budget = min(vmem_cap - 8 * 2**20, vmem_cap * 7 // 8)

    w_bytes = (w1.size + w2.size) * w_itm + (b1.size + b2.size) * 4

    def est_vmem(bb_):
        return (w_bytes                              # weights + biases, single-buffered
                + 2 * bb_ * D * (x_itm + o_itm)      # double-buffered x / out tiles
                + bb_ * D * w_itm                    # in-kernel bf16 copy of x
                + bb_ * Hp * (4 + w_itm)             # f32 hidden + bf16 copy of h
                + bb_ * D * 4)                       # f32 decoder intermediate

    while est_vmem(bb) > budget and bb > 8:
        bb = max(8, _round_up(bb // 2, 8))
    est = est_vmem(bb)
    if est > budget:
        # TODO(synk): K-tiled weight path (trailing "arbitrary" grid axis over D/H,
        # f32 accumulator scratch + pl.when init/finalize) for weights that don't
        # fit resident in per-core VMEM (matters first on v7x's 64 MiB).
        raise ValueError(f"working set {est >> 20} MiB exceeds the "
                         f"{budget >> 20} MiB single-pass VMEM budget")
    vmem_limit = int(min(budget, max(32 * 2**20, _round_up(est * 5 // 4, 2**20))))

    grid = (pl.cdiv(B, bb),)

    cost = pl.CostEstimate(
        flops=4 * B * D * Hp,                        # two matmuls
        transcendentals=B * (Hp + D),                # sigmoids
        bytes_accessed=B * D * (x_itm + o_itm) + w_bytes,
    )

    const = pl.Buffered(1)   # constant-index blocks: DMA'd once, no double buffer
    in_specs = [
        pl.BlockSpec((bb, D), lambda i: (i, 0)),                        # x tile
        pl.BlockSpec((D, Hp), lambda i: (0, 0), pipeline_mode=const),   # W1 (full)
        pl.BlockSpec((1, Hp), lambda i: (0, 0), pipeline_mode=const),   # b1
        pl.BlockSpec((Hp, D), lambda i: (0, 0), pipeline_mode=const),   # W2 (full)
        pl.BlockSpec((1, D), lambda i: (0, 0), pipeline_mode=const),    # b2
    ]

    return pl.pallas_call(
        _ae_kernel,
        out_shape=jax.ShapeDtypeStruct((B, D), out_dtype),
        grid=grid,
        in_specs=in_specs,
        out_specs=pl.BlockSpec((bb, D), lambda i: (i, 0)),
        compiler_params=pltpu.CompilerParams(
            dimension_semantics=("parallel",),
            vmem_limit_bytes=vmem_limit),
        cost_estimate=cost,
    )(x, w1, b1, w2, b2)


def init_params(key, input_size, hidden_size, dtype=jnp.float32):
    """nn.Linear default init: U(-1/sqrt(fan_in), +1/sqrt(fan_in)); weights as (in, out)."""
    k1, k2, k3, k4 = jax.random.split(key, 4)
    bound1 = 1.0 / (input_size ** 0.5)
    bound2 = 1.0 / (hidden_size ** 0.5)
    w1 = jax.random.uniform(k1, (input_size, hidden_size), dtype, -bound1, bound1)
    b1 = jax.random.uniform(k2, (hidden_size,), dtype, -bound1, bound1)
    w2 = jax.random.uniform(k3, (hidden_size, input_size), dtype, -bound2, bound2)
    b2 = jax.random.uniform(k4, (input_size,), dtype, -bound2, bound2)
    return w1, b1, w2, b2


if __name__ == "__main__":
    key = jax.random.PRNGKey(0)
    kx, kp = jax.random.split(key)

    # input_size = total pixels of a flattened image (14x14 = 196, exercises padding)
    batch, input_size, hidden_size = 8, 196, 64
    x = jax.random.uniform(kx, (batch, input_size), jnp.float32)
    w1, b1, w2, b2 = init_params(kp, input_size, hidden_size)

    # Weight pad/cast happens once here, NOT on every forward call.
    params = prepare_params(w1, b1, w2, b2)

    out = autoencoder_forward(x, *params)
    out = jax.block_until_ready(out)

    # Plain-JAX f32 reference; tolerance loosened for the bf16 MXU path.
    ref = jax.nn.sigmoid(jax.nn.sigmoid(x @ w1 + b1) @ w2 + b2)
    assert out.shape == (batch, input_size)
    max_err = float(jnp.max(jnp.abs(out - ref)))
    assert jnp.allclose(out, ref, atol=1e-2, rtol=1e-2), f"max abs err {max_err}"

    print("KERNEL_OK")
</pallas_src>

<mosaic_0001>
module attributes {stable_mosaic.version = 11 : i64} {
  func.func @_ae_kernel(%arg0: i32, %arg1: memref<8x196xf32, #tpu.memory_space<vmem>>, %arg2: memref<196x128xbf16, #tpu.memory_space<vmem>>, %arg3: memref<1x128xf32, #tpu.memory_space<vmem>>, %arg4: memref<128x196xbf16, #tpu.memory_space<vmem>>, %arg5: memref<1x196xf32, #tpu.memory_space<vmem>>, %arg6: memref<8x196xf32, #tpu.memory_space<vmem>>) attributes {dimension_semantics = [#tpu.dimension_semantics<parallel>], iteration_bounds = array<i64: 1>, scalar_prefetch = 0 : i64, scratch_operands = 0 : i64, tpu.core_type = #tpu.core_type<tc>, window_params = [{transform_indices = @transform_0, window_bounds = array<i64: 8, 196>}, {pipeline_mode = #tpu.pipeline_mode<synchronous>, transform_indices = @transform_1, window_bounds = array<i64: 196, 128>}, {pipeline_mode = #tpu.pipeline_mode<synchronous>, transform_indices = @transform_2, window_bounds = array<i64: 1, 128>}, {pipeline_mode = #tpu.pipeline_mode<synchronous>, transform_indices = @transform_3, window_bounds = array<i64: 128, 196>}, {pipeline_mode = #tpu.pipeline_mode<synchronous>, transform_indices = @transform_4, window_bounds = array<i64: 1, 196>}, {transform_indices = @transform_5, window_bounds = array<i64: 8, 196>}]} {
    %c0 = arith.constant 0 : index
    %c0_0 = arith.constant 0 : index
    %0 = vector.load %arg1[%c0, %c0_0] : memref<8x196xf32, #tpu.memory_space<vmem>>, vector<8x196xf32>
    %1 = arith.truncf %0 : vector<8x196xf32> to vector<8x196xbf16>
    %c0_1 = arith.constant 0 : index
    %c0_2 = arith.constant 0 : index
    %2 = vector.load %arg2[%c0_1, %c0_2] : memref<196x128xbf16, #tpu.memory_space<vmem>>, vector<196x128xbf16>
    %cst = arith.constant dense<0.000000e+00> : vector<8x128xf32>
    %3 = tpu.matmul %1, %2, %cst {dimension_numbers = #tpu.dot_dimension_numbers<[1], [0], [0], [1], [0, 0, 1, 1], [], []>} : vector<8x196xbf16>, vector<196x128xbf16>, vector<8x128xf32> -> vector<8x128xf32>
    %c0_3 = arith.constant 0 : index
    %c0_4 = arith.constant 0 : index
    %4 = vector.load %arg3[%c0_3, %c0_4] : memref<1x128xf32, #tpu.memory_space<vmem>>, vector<1x128xf32>
    %5 = vector.broadcast %4 : vector<1x128xf32> to vector<8x128xf32>
    %6 = arith.addf %3, %5 : vector<8x128xf32>
    %7 = arith.negf %6 : vector<8x128xf32>
    %8 = math.exp %7 : vector<8x128xf32>
    %cst_5 = arith.constant 1.000000e+00 : f32
    %9 = vector.broadcast %cst_5 : f32 to vector<8x128xf32>
    %10 = arith.addf %9, %8 : vector<8x128xf32>
    %11 = arith.divf %9, %10 : vector<8x128xf32>
    %12 = arith.truncf %11 : vector<8x128xf32> to vector<8x128xbf16>
    %c0_6 = arith.constant 0 : index
    %c0_7 = arith.constant 0 : index
    %13 = vector.load %arg4[%c0_6, %c0_7] : memref<128x196xbf16, #tpu.memory_space<vmem>>, vector<128x196xbf16>
    %cst_8 = arith.constant dense<0.000000e+00> : vector<8x196xf32>
    %14 = tpu.matmul %12, %13, %cst_8 {dimension_numbers = #tpu.dot_dimension_numbers<[1], [0], [0], [1], [0, 0, 1, 1], [], []>} : vector<8x128xbf16>, vector<128x196xbf16>, vector<8x196xf32> -> vector<8x196xf32>
    %c0_9 = arith.constant 0 : index
    %c0_10 = arith.constant 0 : index
    %15 = vector.load %arg5[%c0_9, %c0_10] : memref<1x196xf32, #tpu.memory_space<vmem>>, vector<1x196xf32>
    %16 = vector.broadcast %15 : vector<1x196xf32> to vector<8x196xf32>
    %17 = arith.addf %14, %16 : vector<8x196xf32>
    %18 = arith.negf %17 : vector<8x196xf32>
    %19 = math.exp %18 : vector<8x196xf32>
    %cst_11 = arith.constant 1.000000e+00 : f32
    %20 = vector.broadcast %cst_11 : f32 to vector<8x196xf32>
    %21 = arith.addf %20, %19 : vector<8x196xf32>
    %22 = arith.divf %20, %21 : vector<8x196xf32>
    %c0_12 = arith.constant 0 : index
    %c0_13 = arith.constant 0 : index
    %23 = vector.load %arg6[%c0_12, %c0_13] : memref<8x196xf32, #tpu.memory_space<vmem>>, vector<8x196xf32>
    tpu.vector_store %arg6[%c0_12, %c0_13], %22 {strides = array<i32>} : memref<8x196xf32, #tpu.memory_space<vmem>>, vector<8x196xf32>,
    return
  }
  func.func @transform_0(%arg0: i32) -> (i32, i32) {
    %c0_i32 = arith.constant 0 : i32
    %c0_i32_0 = arith.constant 0 : i32
    return %arg0, %c0_i32 : i32, i32
  }
  func.func @transform_1(%arg0: i32) -> (i32, i32) {
    %c0_i32 = arith.constant 0 : i32
    %c0_i32_0 = arith.constant 0 : i32
    %c0_i32_1 = arith.constant 0 : i32
    return %c0_i32, %c0_i32_0 : i32, i32
  }
  func.func @transform_2(%arg0: i32) -> (i32, i32) {
    %c0_i32 = arith.constant 0 : i32
    %c0_i32_0 = arith.constant 0 : i32
    %c0_i32_1 = arith.constant 0 : i32
    return %c0_i32, %c0_i32_0 : i32, i32
  }
  func.func @transform_3(%arg0: i32) -> (i32, i32) {
    %c0_i32 = arith.constant 0 : i32
    %c0_i32_0 = arith.constant 0 : i32
    %c0_i32_1 = arith.constant 0 : i32
    return %c0_i32, %c0_i32_0 : i32, i32
  }
  func.func @transform_4(%arg0: i32) -> (i32, i32) {
    %c0_i32 = arith.constant 0 : i32
    %c0_i32_0 = arith.constant 0 : i32
    %c0_i32_1 = arith.constant 0 : i32
    return %c0_i32, %c0_i32_0 : i32, i32
  }
  func.func @transform_5(%arg0: i32) -> (i32, i32) {
    %c0_i32 = arith.constant 0 : i32
    %c0_i32_0 = arith.constant 0 : i32
    return %arg0, %c0_i32 : i32, i32
  }
}

</mosaic_0001>

<bundles_post_ra>
// kernel: autoencoder_forward.1
= control target key start
LH: loop header
LB: loop body
LE: loop exit
PB: predicated region body
PF: predicated region fallthrough
CT: control target
= control target key end

     0   :  { %vm134_vm0 = vcmask 1041408   ;;  %s735_s0 = inlined_call_operand.vmem [shape: f32[8,196], index: 0, kind: input, shape index: {}]   ;;  %s736_s1 = inlined_call_operand.vmem [shape: bf16[196,128], index: 1, kind: input, shape index: {}]   ;;  %s737_s2 = inlined_call_operand.vmem [shape: f32[1,128], index: 2, kind: input, shape index: {}]   ;;  %s738_s3 = inlined_call_operand.vmem [shape: bf16[128,196], index: 3, kind: input, shape index: {}]   ;;  %s739_s4 = inlined_call_operand.vmem [shape: f32[1,196], index: 4, kind: input, shape index: {}]   ;;  %s740_s5 = inlined_call_operand.hbm [shape: f32[8,196], index: 5, kind: output, shape index: {}]  }
   0x1   :  { %v491_v0 = vld [vmem:[%s736_s1 + $0x38] sm:$0xff]  ;;  %v50_v1 = vld [vmem:[%s736_s1 + $0x60] sm:$0x3]  ;;  %v490_v3 = vld [vmem:[%s736_s1 + $0x30] sm:$0xff] }
   0x2   :  { %v104_v2 = vunpack.c.l.b16 %v50_v1  ;;  %138 = vmatpush.bf16.msra.mxu0 %v491_v0 }
   0x4   :  { %v117_v4 = vpack.c.b16 %v104_v2, %v104_v2 }
   0x6   :  { %v136_v5 = vsel %vm134_vm0, %v117_v4, 0 }
   0x7   :  { %10 = vsyncpa [#allocation3], 0  ;;  %139 = vmatpush.bf16.msra.mxu0 %v490_v3  ;;  %154 = vmatpush.bf16.msra.mxu1 %v136_v5  ;;  %v489_v6 = vld [vmem:[%s736_s1 + $0x28] sm:$0xff]  ;;  %v495_v7 = vld [vmem:[%s736_s1 + $0x58] sm:$0xff]  ;;  %vm130_vm1 = vcmask 556032   ;;  %s359_s11 = sshll.u32 %s740_s5, 4  ;;  %s360_s11 = int_to_ptr.hbm [resolvable:$true] %s359_s11 }
   0x8   :  { %v488_v8 = vld [vmem:[%s736_s1 + $0x20] sm:$0xff]  ;;  %v494_v9 = vld [vmem:[%s736_s1 + $0x50] sm:$0xff]  ;;  %v487_v10 = vld [vmem:[%s736_s1 + $0x18] sm:$0xff] }
   0x9   :  { %v493_v11 = vld [vmem:[%s736_s1 + $0x48] sm:$0xff]  ;;  %v486_v12 = vld [vmem:[%s736_s1 + $0x10] sm:$0xff]  ;;  %v492_v13 = vld [vmem:[%s736_s1 + $0x40] sm:$0xff] }
   0xa   :  { %v23_v14 = vld [vmem:[%s735_s0 + $0x8] sm:$0xff]  ;;  %v484_v17 = vld [vmem:[%s736_s1] sm:$0xff]  ;;  %v476_v20 = vld [vmem:[%s738_s3 + $0x70] sm:$0xf] }
   0xb   :  { %140 = vmatpush.bf16.msra.mxu0 %v489_v6  ;;  %155 = vmatpush.bf16.msra.mxu1 %v495_v7  ;;  %v25_v15 = vpack.c.bf16 %v23_v14, %v23_v14  ;;  %v485_v16 = vld [vmem:[%s736_s1 + $0x8] sm:$0xff]  ;;  %v22_v18 = vld [vmem:[%s735_s0] sm:$0xff]  ;;  %v511_v21 = vld [vmem:[%s738_s3 + $0x74] sm:$0xf0] }
   0xc   :  { %v24_v19 = vpack.c.bf16 %v22_v18, %v22_v18  ;;  %v510_v22 = vld [vmem:[%s738_s3 + $0x74] sm:$0xf]  ;;  %v477_v23 = vor.u32 %v511_v21, %v476_v20  ;;  %v478_v24 = vld [vmem:[%s738_s3 + $0x78] sm:$0xf0]  ;;  %v468_v26 = vld [vmem:[%s738_s3 + $0x60] sm:$0xf] }
   0xd   :  { %v481_v25 = vor.u32 %v510_v22, %v478_v24  ;;  %v509_v27 = vld [vmem:[%s738_s3 + $0x64] sm:$0xf0]  ;;  %v508_v28 = vld [vmem:[%s738_s3 + $0x64] sm:$0xf]  ;;  %v470_v30 = vld [vmem:[%s738_s3 + $0x68] sm:$0xf0] }
   0xe   :  { %286 = vmatpush.bf16.msra.mxu2 %v477_v23  ;;  %v469_v29 = vor.u32 %v509_v27, %v468_v26  ;;  %v473_v31 = vor.u32 %v508_v28, %v470_v30  ;;  %v460_v32 = vld [vmem:[%s738_s3 + $0x50] sm:$0xf]  ;;  %v507_v33 = vld [vmem:[%s738_s3 + $0x54] sm:$0xf0]  ;;  %v506_v34 = vld [vmem:[%s738_s3 + $0x54] sm:$0xf] }
   0xf   :  { %141 = vmatpush.bf16.msra.mxu0 %v488_v8  ;;  %156 = vmatpush.bf16.msra.mxu1 %v494_v9  ;;  %v461_v35 = vor.u32 %v507_v33, %v460_v32  ;;  %v462_v36 = vld [vmem:[%s738_s3 + $0x58] sm:$0xf0]  ;;  %v452_v38 = vld [vmem:[%s738_s3 + $0x40] sm:$0xf]  ;;  %v505_v39 = vld [vmem:[%s738_s3 + $0x44] sm:$0xf0] }
  0x10   :  { %299 = vmatpush.bf16.msra.mxu3 %v481_v25  ;;  %v465_v37 = vor.u32 %v506_v34, %v462_v36  ;;  %v504_v40 = vld [vmem:[%s738_s3 + $0x44] sm:$0xf]  ;;  %v453_v41 = vor.u32 %v505_v39, %v452_v38  ;;  %v454_v42 = vld [vmem:[%s738_s3 + $0x48] sm:$0xf0]  ;;  %v444_v44 = vld [vmem:[%s738_s3 + $0x30] sm:$0xf] }
  0x11   :  { %v457_v43 = vor.u32 %v504_v40, %v454_v42  ;;  %v503_v45 = vld [vmem:[%s738_s3 + $0x34] sm:$0xf0]  ;;  %v502_v46 = vld [vmem:[%s738_s3 + $0x34] sm:$0xf]  ;;  %v446_v48 = vld [vmem:[%s738_s3 + $0x38] sm:$0xf0] }
  0x12   :  { %287 = vmatpush.bf16.msra.mxu2 %v469_v29  ;;  %v445_v47 = vor.u32 %v503_v45, %v444_v44  ;;  %v436_v49 = vld [vmem:[%s738_s3 + $0x20] sm:$0xf]  ;;  %v501_v50 = vld [vmem:[%s738_s3 + $0x24] sm:$0xf0]  ;;  %v449_v51 = vor.u32 %v502_v46, %v446_v48  ;;  %v500_v52 = vld [vmem:[%s738_s3 + $0x24] sm:$0xf] }
  0x13   :  { %142 = vmatpush.bf16.msra.mxu0 %v487_v10  ;;  %157 = vmatpush.bf16.msra.mxu1 %v493_v11  ;;  %v438_v53 = vld [vmem:[%s738_s3 + $0x28] sm:$0xf0]  ;;  %v437_v54 = vor.u32 %v501_v50, %v436_v49  ;;  %v428_v56 = vld [vmem:[%s738_s3 + $0x10] sm:$0xf]  ;;  %v499_v57 = vld [vmem:[%s738_s3 + $0x14] sm:$0xf0] }
  0x14   :  { %300 = vmatpush.bf16.msra.mxu3 %v473_v31  ;;  %v441_v55 = vor.u32 %v500_v52, %v438_v53  ;;  %v498_v58 = vld [vmem:[%s738_s3 + $0x14] sm:$0xf]  ;;  %v430_v59 = vld [vmem:[%s738_s3 + $0x18] sm:$0xf0]  ;;  %v429_v61 = vor.u32 %v499_v57, %v428_v56  ;;  %v420_v63 = vld [vmem:[%s738_s3] sm:$0xf] }
  0x15   :  { %v433_v62 = vor.u32 %v498_v58, %v430_v59  ;;  %v497_v0 = vld [vmem:[%s738_s3 + $0x4] sm:$0xf0]  ;;  %v496_v1 = vld [vmem:[%s738_s3 + $0x4] sm:$0xf]  ;;  %v422_v2 = vld [vmem:[%s738_s3 + $0x8] sm:$0xf0] }
  0x16   :  { %288 = vmatpush.bf16.msra.mxu2 %v461_v35  ;;  %v421_v3 = vor.u32 %v497_v0, %v420_v63  ;;  %v513_v4 = vld [vmem:[%s737_s2] ss:$0 sm:$0xff]  ;;  %v425_v5 = vor.u32 %v496_v1, %v422_v2 }
  0x17   :  { %143 = vmatpush.bf16.msra.mxu0 %v486_v12  ;;  %158 = vmatpush.bf16.msra.mxu1 %v492_v13  ;;  %v200_v25 = vld [vmem:[%s739_s4] sm:$0x3]  ;;  %s552_s4 = smov [#allocation2]  }
  0x18   :  { %301 = vmatpush.bf16.msra.mxu3 %v465_v37  ;;  %v202_v26 = vperm.slane %v200_v25, 0  ;;  %v203_v27 = vperm.slane %v200_v25, 1  ;;  %s357_s8 = sshll.u32 %s552_s4, 4  ;;  %s358_s8 = int_to_ptr.vmem [resolvable:$true] %s357_s8 }
  0x1a   :  { %416 = vmatmul.msk.bf16.vlgmr.msra.gmra.mxu1 %vm130_vm1, %v25_v15  ;;  %289 = vmatpush.bf16.msra.mxu2 %v453_v41 }
  0x1b   :  { %144 = vmatpush.bf16.msra.mxu0 %v485_v16 }
  0x1c   :  { %302 = vmatpush.bf16.msra.mxu3 %v457_v43 }
  0x1e   :  { %290 = vmatpush.bf16.msra.mxu2 %v445_v47 }
  0x1f   :  { %145 = vmatpush.bf16.msra.mxu0 %v484_v17 }
  0x20   :  { %303 = vmatpush.bf16.msra.mxu3 %v449_v51 }
  0x22   :  { %146 = vmatmul.bf16.vlgmr.msra.gmra.mxu0 %v24_v19  ;;  %291 = vmatpush.bf16.msra.mxu2 %v437_v54 }
  0x24   :  { %304 = vmatpush.bf16.msra.mxu3 %v441_v55 }
  0x26   :  { %292 = vmatpush.bf16.msra.mxu2 %v429_v61 }
  0x28   :  { %305 = vmatpush.bf16.msra.mxu3 %v433_v62 }
  0x2a   :  { %293 = vmatpush.bf16.msra.mxu2 %v421_v3 }
  0x2c   :  { %306 = vmatpush.bf16.msra.mxu3 %v425_v5 }
  0x97   :  { %v160_v60 = vpop.f32.mrf.mxu1 }
  0x9f   :  { %v147_v6 = vpop.f32.mrf.mxu0  ;;  %v162_v7 = vpop.f32.mrf.mxu1 }
  0xa0   :  { %v148_v8 = vadd.f32 %v513_v4, %v147_v6 }
  0xa2   :  { %v161_v9 = vadd.f32 %v160_v60, %v148_v8 }
  0xa4   :  { %v417_v10 = vmul.f32 -1.442695, %v161_v9 }
  0xa6   :  { %514 = vpow2.f32 %v417_v10 }
  0xa7   :  { %v149_v11 = vpop.f32.mrf.mxu0 }
  0xac   :  { %v515_v12 = vpop.eup %514 }
  0xad   :  { %v167_v13 = vadd.f32 1.0, %v515_v12 }
  0xaf   :  { %516 = vrcp.f32 %v167_v13  ;;  %v179_v17 = vand.u32 2147483648, %v167_v13  ;;  %v177_v19 = vand.u32 2147483647, %v167_v13  ;;  %vm173_vm3 = vweird.f32 %v167_v13 }
  0xb1   :  { %v180_v21 = vor.u32 1.1754944e-38, %v179_v17  ;;  %vm178_vm5 = vcmp.eq.f32.partialorder %v177_v19, 8.507059e+37 }
  0xb5   :  { %v517_v14 = vpop.eup %516 }
  0xb6   :  { %v169_v15 = vmul.f32 %v517_v14, %v167_v13  ;;  %vm174_vm2 = vweird.f32 %v517_v14 }
  0xb7   :  { %vm175_vm4 = vmor %vm173_vm3, %vm174_vm2 }
  0xb8   :  { %v170_v16 = vsub.f32 1.0, %v169_v15 }
  0xba   :  { %v171_v18 = vmul.f32 %v517_v14, %v170_v16 }
  0xbc   :  { %v172_v20 = vadd.f32 %v517_v14, %v171_v18 }
  0xbe   :  { %v176_v22 = vsel %vm175_vm4, %v517_v14, %v172_v20 }
  0xbf   :  { %v181_v23 = vsel %vm178_vm5, %v180_v21, %v176_v22 }
  0xc0   :  { %v183_v24 = vpack.c.bf16 %v181_v23, %v181_v23 }
  0xc2   :  { %294 = vmatmul.bf16.vlgmr.msra.gmra.mxu2 %v183_v24  ;;  %307 = vmatmul.bf16.vlgmr.msra.gmra.mxu3 %v183_v24 }
 0x145   :  { %v295_v28 = vpop.f32.mrf.mxu2  ;;  %v308_v29 = vpop.f32.mrf.mxu3 }
 0x146   :  { %v296_v30 = vadd.f32 %v295_v28, %v202_v26  ;;  %v309_v31 = vadd.f32 %v308_v29, %v203_v27 }
 0x148   :  { %v482_v32 = vmul.f32 -1.442695, %v296_v30  ;;  %v483_v33 = vmul.f32 -1.442695, %v309_v31 }
 0x14a   :  { %518 = vpow2.f32 %v482_v32 }
 0x14b   :  { %520 = vpow2.f32 %v483_v33 }
 0x14d   :  { %v297_v34 = vpop.f32.mrf.mxu2  ;;  %v310_v35 = vpop.f32.mrf.mxu3 }
 0x150   :  { %v519_v36 = vpop.eup %518 }
 0x151   :  { %v521_v37 = vpop.eup %520  ;;  %v318_v38 = vadd.f32 1.0, %v519_v36 }
 0x152   :  { %v319_v39 = vadd.f32 1.0, %v521_v37 }
 0x153   :  { %522 = vrcp.f32 %v318_v38  ;;  %v331_v46 = vand.u32 2147483648, %v318_v38  ;;  %v329_v48 = vand.u32 2147483647, %v318_v38  ;;  %vm325_vm8 = vweird.f32 %v318_v38 }
 0x154   :  { %524 = vrcp.f32 %v319_v39  ;;  %v346_v49 = vand.u32 2147483648, %v319_v39  ;;  %v344_v51 = vand.u32 2147483647, %v319_v39  ;;  %vm340_vm10 = vweird.f32 %v319_v39 }
 0x155   :  { %v332_v53 = vor.u32 1.1754944e-38, %v331_v46  ;;  %vm330_vm11 = vcmp.eq.f32.partialorder %v329_v48, 8.507059e+37 }
 0x156   :  { %v347_v56 = vor.u32 1.1754944e-38, %v346_v49  ;;  %vm345_vm13 = vcmp.eq.f32.partialorder %v344_v51, 8.507059e+37 }
 0x159   :  { %v523_v40 = vpop.eup %522 }
 0x15a   :  { %v525_v41 = vpop.eup %524  ;;  %v321_v42 = vmul.f32 %v523_v40, %v318_v38  ;;  %vm326_vm6 = vweird.f32 %v523_v40 }
 0x15b   :  { %v336_v43 = vmul.f32 %v525_v41, %v319_v39  ;;  %vm341_vm7 = vweird.f32 %v525_v41  ;;  %vm327_vm9 = vmor %vm325_vm8, %vm326_vm6 }
 0x15c   :  { %v322_v44 = vsub.f32 1.0, %v321_v42  ;;  %vm342_vm12 = vmor %vm340_vm10, %vm341_vm7 }
 0x15d   :  { %v337_v45 = vsub.f32 1.0, %v336_v43 }
 0x15e   :  { %v323_v47 = vmul.f32 %v523_v40, %v322_v44 }
 0x15f   :  { %v338_v50 = vmul.f32 %v525_v41, %v337_v45 }
 0x160   :  { %v324_v52 = vadd.f32 %v523_v40, %v323_v47 }
 0x161   :  { %v339_v54 = vadd.f32 %v525_v41, %v338_v50 }
 0x162   :  { %v328_v55 = vsel %vm327_vm9, %v523_v40, %v324_v52 }
 0x163   :  { %v333_v57 = vsel %vm330_vm11, %v332_v53, %v328_v55  ;;  %v343_v58 = vsel %vm342_vm12, %v525_v41, %v339_v54 }
 0x164   :  { %v348_v59 = vsel %vm345_vm13, %v347_v56, %v343_v58  ;;  %350 = vst [vmem:[#allocation2] sm:$0xff] %v333_v57 }
 0x165   :  { %351 = vst.msk [vmem:[#allocation2 + $0x8] sm:$0xff] %vm130_vm1, %v348_v59 }
 0x166   :  { %362 = dma.vmem_to_hbm [thread:$0]  %s358_s8, 256, %s360_s11, [#allocation3]  }
 0x167   :  { %550 = dma.done.wait [#allocation3], 256  }
 0x168   :  { %551 = vsyncadd [#allocation3], 4294967040 }
 0x169   :  { %367 = vsyncpa [#allocation3], 1 }

</bundles_post_ra>
